<compile_context>
chip_gen: v7x
topology: tpu7x:2x2x1
jax: 0.10.0
libtpu: 0.0.40
codegen_flags: <defaults>
</compile_context>

<pallas_src>
import jax
import jax.numpy as jnp
from jax.experimental import pallas as pl
from jax.experimental.pallas import tpu as pltpu


def _round_up(x, m):
    return ((x + m - 1) // m) * m


def _device_vmem_bytes():
    # Narrow guard: hardware query only (not the kernel build).
    try:
        return int(pltpu.get_tpu_info().vmem_capacity_bytes)
    except Exception:
        return 64 << 20  # conservative (v7x per-TC VMEM)


def _make_kernel(compute_dtype):
    def kernel(x_ref, w_ref, b_ref, o_ref):
        # x_ref: (tm, Kp) row tile; w_ref: (Kp, tn) pre-transposed weight tile;
        # b_ref: (1, tn) bias tile; o_ref: (tm, tn) output tile.
        x = x_ref[...]
        w = w_ref[...]
        if compute_dtype is not None:
            if x.dtype != compute_dtype:
                x = x.astype(compute_dtype)
            if w.dtype != compute_dtype:
                w = w.astype(compute_dtype)
        # y[m, n] = sum_k x[m, k] * Wt[k, n]  ==  (x @ W.T)[m, n]
        y = jnp.dot(x, w, preferred_element_type=jnp.float32)
        y = y + b_ref[...].astype(jnp.float32)
        # LeakyReLU, negative_slope = 0.1 (in f32)
        y = jnp.where(y > 0, y, 0.1 * y)
        o_ref[...] = y.astype(o_ref.dtype)

    return kernel


def resmlp_forward(x, weight, bias, *, compute_dtype=None):
    """x: (..., n_feats); weight: (n_feats, n_feats) PyTorch (out,in); bias: (n_feats,)."""
    n_feats = weight.shape[0]
    assert weight.shape == (n_feats, n_feats)
    assert bias.shape == (n_feats,)
    out_dtype = x.dtype
    orig_shape = x.shape

    x2d = x.reshape(-1, n_feats)
    M, K = x2d.shape
    Kp = _round_up(K, 128)  # lane-dense feature axis

    # One-time weight transpose in the wrapper: kernel then contracts (1,0)
    # (no XLU transpose of the resident weight inside the grid loop).
    wt = weight.T
    if compute_dtype is not None:
        wt = wt.astype(compute_dtype)  # one-time cast; halves W HBM traffic for bf16
    b2d = bias.reshape(1, K)

    # Zero-pad the feature axis only when n_feats is not lane-aligned
    # (contraction axis must be zero, not garbage).  No padding over M.
    if Kp != K:
        x2d = jnp.pad(x2d, ((0, 0), (0, Kp - K)))
        wt = jnp.pad(wt, ((0, Kp - K), (0, Kp - K)))
        b2d = jnp.pad(b2d, ((0, 0), (0, Kp - K)))

    x_item = jnp.dtype(x2d.dtype).itemsize
    w_item = jnp.dtype(wt.dtype).itemsize
    o_item = jnp.dtype(out_dtype).itemsize
    b_item = jnp.dtype(b2d.dtype).itemsize

    dev_vmem = _device_vmem_bytes()
    cap = dev_vmem - (8 << 20)        # hard cap for vmem_limit_bytes (Mosaic headroom)
    budget = (dev_vmem * 3) // 4      # tile-sizing budget

    # N (output-feature) tiling only when a resident (Kp,Kp) weight would be large.
    w_budget = max(budget // 4, 4 << 20)
    if Kp * Kp * w_item <= w_budget:
        tn = Kp
    else:
        tn = max(128, ((w_budget // (Kp * w_item)) // 128) * 128)
        tn = min(tn, Kp)

    def vmem_need(tm_):
        # x / out / W / bias double-buffered; one f32 temp for bias-add + LeakyReLU.
        return (2 * (tm_ * Kp * x_item) + 2 * (tm_ * tn * o_item)
                + 2 * (Kp * tn * w_item) + 2 * (tn * b_item)
                + tm_ * tn * 4)

    # Grow the row tile as large as the VMEM budget allows.
    tm = 8
    for cand in (2048, 1024, 512, 256, 128, 64, 32, 16, 8):
        if vmem_need(cand) <= budget:
            tm = cand
            break
    tm = min(tm, _round_up(M, 8))
    # Ensure >= 2 row blocks when there is enough work, so both v7x TCs are used.
    if M > 8 and (M + tm - 1) // tm < 2:
        tm = _round_up((M + 1) // 2, 8)

    ni = (M + tm - 1) // tm   # ragged last block handled by Pallas (masked writes)
    nj = (K + tn - 1) // tn

    cost = pl.CostEstimate(
        flops=2 * M * Kp * Kp,
        transcendentals=0,
        bytes_accessed=(M * Kp * x_item           # x (read once; resident across j)
                        + ni * Kp * Kp * w_item   # W streamed per row-block when N-tiled
                        + Kp * b_item             # bias
                        + M * K * o_item),        # out
    )

    need = vmem_need(tm)
    vmem_limit = int(min(cap, max(need + (8 << 20), 32 << 20)))

    out = pl.pallas_call(
        _make_kernel(compute_dtype),
        out_shape=jax.ShapeDtypeStruct((M, K), out_dtype),
        grid_spec=pltpu.PrefetchScalarGridSpec(
            num_scalar_prefetch=0,
            grid=(ni, nj),
            in_specs=[
                pl.BlockSpec((tm, Kp), lambda i, j: (i, 0)),   # x rows (resident across j)
                pl.BlockSpec((Kp, tn), lambda i, j: (0, j)),   # W.T column block
                pl.BlockSpec((1, tn), lambda i, j: (0, j)),    # bias block
            ],
            out_specs=pl.BlockSpec((tm, tn), lambda i, j: (i, j)),
        ),
        compiler_params=pltpu.CompilerParams(
            dimension_semantics=("parallel", "parallel"),
            vmem_limit_bytes=vmem_limit,
        ),
        cost_estimate=cost,
    )(x2d, wt, b2d)

    return out.reshape(orig_shape)


def _ref_resmlp(x, weight, bias):
    y = x @ weight.T + bias
    return jnp.where(y > 0, y, 0.1 * y)


if __name__ == "__main__":
    # Module-consistent shapes: n_feats=512 (module default), small leading dims.
    n_feats = 512
    key = jax.random.PRNGKey(0)
    kx, kw, kb, kx2, kw2, kb2 = jax.random.split(key, 6)

    x = jax.random.normal(kx, (2, 8, n_feats), dtype=jnp.float32)
    weight = jax.random.normal(kw, (n_feats, n_feats), dtype=jnp.float32) * 0.05
    bias = jax.random.normal(kb, (n_feats,), dtype=jnp.float32) * 0.05

    out = jax.block_until_ready(resmlp_forward(x, weight, bias))
    ref = _ref_resmlp(x, weight, bias)
    assert out.shape == x.shape
    assert jnp.allclose(out, ref, atol=1e-4, rtol=1e-4), "mismatch vs reference (n_feats=512)"

    # Ragged-M / non-lane-aligned features path (n_feats % 128 != 0, M % tm != 0).
    n2 = 32
    x2 = jax.random.normal(kx2, (3, 5, n2), dtype=jnp.float32)
    w2 = jax.random.normal(kw2, (n2, n2), dtype=jnp.float32) * 0.05
    b2 = jax.random.normal(kb2, (n2,), dtype=jnp.float32) * 0.05
    out2 = jax.block_until_ready(resmlp_forward(x2, w2, b2))
    ref2 = _ref_resmlp(x2, w2, b2)
    assert out2.shape == x2.shape
    assert jnp.allclose(out2, ref2, atol=1e-4, rtol=1e-4), "mismatch vs reference (n_feats=32)"

    # bf16 compute path (MXU-native on v6e/v7x, much faster than f32 on v5e);
    # f32 accumulation, so it tracks a bf16-input reference closely.
    out_bf = jax.block_until_ready(
        resmlp_forward(x, weight, bias, compute_dtype=jnp.bfloat16))
    ref_bf = _ref_resmlp(x.astype(jnp.bfloat16).astype(jnp.float32),
                         weight.astype(jnp.bfloat16).astype(jnp.float32), bias)
    assert out_bf.shape == x.shape
    assert jnp.allclose(out_bf, ref_bf, atol=5e-3, rtol=5e-3), "mismatch vs bf16 reference"

    print("KERNEL_OK")
</pallas_src>

<mosaic_0001>
module attributes {stable_mosaic.version = 11 : i64} {
  func.func @kernel(%arg0: i32, %arg1: i32, %arg2: memref<8x512xf32, #tpu.memory_space<vmem>>, %arg3: memref<512x512xf32, #tpu.memory_space<vmem>>, %arg4: memref<1x512xf32, #tpu.memory_space<vmem>>, %arg5: memref<8x512xf32, #tpu.memory_space<vmem>>) attributes {dimension_semantics = [#tpu.dimension_semantics<parallel>, #tpu.dimension_semantics<parallel>], iteration_bounds = array<i64: 2, 1>, scalar_prefetch = 0 : i64, scratch_operands = 0 : i64, tpu.core_type = #tpu.core_type<tc>, window_params = [{transform_indices = @transform_0, window_bounds = array<i64: 8, 512>}, {transform_indices = @transform_1, window_bounds = array<i64: 512, 512>}, {transform_indices = @transform_2, window_bounds = array<i64: 1, 512>}, {transform_indices = @transform_3, window_bounds = array<i64: 8, 512>}]} {
    %c0 = arith.constant 0 : index
    %c0_0 = arith.constant 0 : index
    %0 = vector.load %arg2[%c0, %c0_0] : memref<8x512xf32, #tpu.memory_space<vmem>>, vector<8x512xf32>
    %c0_1 = arith.constant 0 : index
    %c0_2 = arith.constant 0 : index
    %1 = vector.load %arg3[%c0_1, %c0_2] : memref<512x512xf32, #tpu.memory_space<vmem>>, vector<512x512xf32>
    %cst = arith.constant dense<0.000000e+00> : vector<8x512xf32>
    %2 = tpu.matmul %0, %1, %cst {dimension_numbers = #tpu.dot_dimension_numbers<[1], [0], [0], [1], [0, 0, 1, 1], [], []>} : vector<8x512xf32>, vector<512x512xf32>, vector<8x512xf32> -> vector<8x512xf32>
    %c0_3 = arith.constant 0 : index
    %c0_4 = arith.constant 0 : index
    %3 = vector.load %arg4[%c0_3, %c0_4] : memref<1x512xf32, #tpu.memory_space<vmem>>, vector<1x512xf32>
    %4 = vector.broadcast %3 : vector<1x512xf32> to vector<8x512xf32>
    %5 = arith.addf %2, %4 : vector<8x512xf32>
    %cst_5 = arith.constant 0.000000e+00 : f32
    %6 = vector.broadcast %cst_5 : f32 to vector<8x512xf32>
    %7 = arith.cmpf ogt, %5, %6 : vector<8x512xf32>
    %cst_6 = arith.constant 1.000000e-01 : f32
    %8 = vector.broadcast %cst_6 : f32 to vector<8x512xf32>
    %9 = arith.mulf %8, %5 : vector<8x512xf32>
    %10 = arith.select %7, %5, %9 : vector<8x512xi1>, vector<8x512xf32>
    %c0_7 = arith.constant 0 : index
    %c0_8 = arith.constant 0 : index
    %11 = vector.load %arg5[%c0_7, %c0_8] : memref<8x512xf32, #tpu.memory_space<vmem>>, vector<8x512xf32>
    tpu.vector_store %arg5[%c0_7, %c0_8], %10 {strides = array<i32>} : memref<8x512xf32, #tpu.memory_space<vmem>>, vector<8x512xf32>,
    return
  }
  func.func @transform_0(%arg0: i32, %arg1: i32) -> (i32, i32) {
    %c0_i32 = arith.constant 0 : i32
    %c0_i32_0 = arith.constant 0 : i32
    return %arg0, %c0_i32 : i32, i32
  }
  func.func @transform_1(%arg0: i32, %arg1: i32) -> (i32, i32) {
    %c0_i32 = arith.constant 0 : i32
    %c0_i32_0 = arith.constant 0 : i32
    return %c0_i32, %arg1 : i32, i32
  }
  func.func @transform_2(%arg0: i32, %arg1: i32) -> (i32, i32) {
    %c0_i32 = arith.constant 0 : i32
    %c0_i32_0 = arith.constant 0 : i32
    return %c0_i32, %arg1 : i32, i32
  }
  func.func @transform_3(%arg0: i32, %arg1: i32) -> (i32, i32) {
    %c0_i32 = arith.constant 0 : i32
    return %arg0, %arg1 : i32, i32
  }
}

</mosaic_0001>

<bundles_post_ra>
// kernel: tpu_custom_call.1
= control target key start
LH: loop header
LB: loop body
LE: loop exit
PB: predicated region body
PF: predicated region fallthrough
CT: control target
= control target key end

     0   :  { %8 = vsyncpa [#allocation3], 0  ;;  %s1706_s0 = inlined_call_operand.hbm [shape: f32[16,512], index: 0, kind: input, shape index: {}]   ;;  %s1707_s1 = inlined_call_operand.hbm [shape: f32[512,512], index: 1, kind: input, shape index: {}]   ;;  %s1708_s2 = inlined_call_operand.vmem [shape: f32[1,512], index: 2, kind: input, shape index: {}]   ;;  %s1709_s3 = inlined_call_operand.hbm [shape: f32[16,512], index: 3, kind: output, shape index: {}]  }
   0x1   :  { %10 = vsyncpa [#allocation3 + $0x1], 0 }
   0x2   :  { %11 = vsyncpa [#allocation6], 0 }
   0x3   :  { %12 = vsyncpa [#allocation4], 0 }
   0x4   :  { %14 = vsyncpa [#allocation4 + $0x1], 0  ;;  %s1479_s12 = smov 0   ;;  %s1481_s13 = smov 0  }
   0x5   :  { %s1483_s14 = smov 0   ;;  %s1485_s15 = smov 0  }
   0x6   :  { %s1487_s16 = smov 0   ;;  %s1489_s17 = smov 0  }
   0x7 LB: > { %s949_s18 = sadd.s32 4294967295, %s1452_s17   ;;  %s950_s19 = sadd.s32 4294967294, %s1452_s17   ;;  %s1452_s17 = sphi %s1489_s17, %s20_s17   ;;  %s1448_s16 = sphi %s1487_s16, %s1733_s16   ;;  %s1444_s15 = sphi %s1485_s15, %s1732_s15   ;;  %s1440_s14 = sphi %s1483_s14, %s1731_s14   ;;  %s1436_s13 = sphi %s1481_s13, %s1730_s13   ;;  %s1432_s12 = sphi %s1479_s12, %s1729_s12  }
   0x8   : > { %p52_p0 = scmp.ne.s32.totalorder %s1436_s13, %s1432_s12  ;;  %p1513_p1 = scmp.eq.s32.totalorder %s949_s18, 0 }
   0x9   : > { %p1517_p2 = scmp.eq.s32.totalorder %s949_s18, 1  ;;  %p136_p3 = scmp.eq.s32.totalorder %s950_s19, 1 }
   0xa   : > { %s1714_s20 = scalar_select %p1513_p1, 1, 0 }
   0xb   : > { %s1715_s21 = scalar_select %p1517_p2, 1, 0 }
   0xc   : > { %p1523_p4 = por %p1513_p1, %p52_p0  ;;  %p951_p5 = scmp.ge.s32.totalorder %s1452_s17, 1 }
   0xd   : > { %p1528_p6 = por %p136_p3, %p52_p0  ;;  %p143_p7 = scmp.lt.s32.totalorder %s1452_s17, 3 }
   0xe   : > { %s1716_s22 = scalar_select %p1523_p4, 1, 0 }
   0xf   : > { %s1717_s23 = scalar_select %p1528_p6, 1, 0 }
  0x10   : > { %p1533_p8 = pnand %p951_p5, %p143_p7  ;;  %s1454_s25 = smov [#allocation5]  }
  0x11   : > { %s158_s26 = sshll.u32 %s1454_s25, 4  ;;  %s32_s28 = sadd.s32 1, %s1448_s16  ;;  %s159_s26 = int_to_ptr.vmem [resolvable:$true] %s158_s26 }
  0x12   : > { %s1718_s24 = scalar_select %p1533_p8, 1, 0 }
  0x13   : > { %p1241_p9 = pneg %p1533_p8  ;;  %s1308_s4 = scalar_lea.hbm %s1707_s1, 32768 }
  0x14   : > { %p1309_p12 = scmp.ne.s32.totalorder %s1707_s1, %s1308_s4  ;;  %p1315_p5 = scmp.lt.u32.totalorder %s1308_s4, %s1707_s1 }
  0x15   : > { %p1542_p11 = pnand %p1241_p9, %p1513_p1 }
  0x17   : > { %p1310_p13 = pneg %p1542_p11 }
  0x19   : > { %p1311_p0 = pnand %p1310_p13, %p1309_p12 }
  0x1b   : > { %p1312_p3 = pneg %p1311_p0 }
  0x1d   : > { %p1317_p7 = pnand %p1315_p5, %p1312_p3 }
  0x1f   : > { %1320 = shalt.err (!%p1317_p7)
}
  0x20   : > { %s1321_s9 = scalar_lea.vmem %s159_s26, 32768  ;;  %p1329_p1 = scmp.lt.s32.totalorder %s159_s26, %s159_s26 }
  0x21   : > { %p1322_p9 = scmp.ne.s32.totalorder %s159_s26, %s1321_s9  ;;  %p1330_p4 = scmp.lt.s32.totalorder %s1321_s9, %s1321_s9 }
  0x23   : > { %p1324_p10 = pnand %p1322_p9, %p1310_p13  ;;  %p1331_p8 = por %p1330_p4, %p1329_p1 }
  0x25   : > { %p1325_p6 = pneg %p1324_p10 }
  0x27   : > { %p1332_p2 = pnand %p1331_p8, %p1325_p6 }
  0x29   : > { %1335 = shalt.err (!%p1332_p2)
}
  0x2a   : > { %s1455_s10 = smov 512   ;;  %s1456_s11 = smov 32  }
  0x2b   : > { %1244 = dma.hbm_to_vmem [thread:$0]  (!%p1542_p11), %s1707_s1, 32768, %s159_s26, [#allocation6], %s1455_s10, %s1455_s10, %s1456_s11  }
  0x2c   : > { %p34_p1 = scmp.ge.s32.totalorder %s32_s28, 2  ;;  %s39_s25 = sadd.s32 1, %s1440_s14 }
  0x2d   : > { %p46_p2 = scmp.ne.s32.totalorder %s1440_s14, %s1436_s13  ;;  %p47_p4 = scmp.eq.s32.totalorder %s1452_s17, 0 }
  0x2e   : > { %s1735_s28 = smov (%p34_p1, %s32_s28), 0  ;;  %p1721_p8 = scmp.ne.s32.totalorder %s1715_s21, 0 }
  0x2f   : > { %p1569_p6 = por %p47_p4, %p46_p2  ;;  %s36_s27 = ssub.s32 %s1448_s16, %s1735_s28 }
  0x30   : > { %p1575_p10 = por %p1721_p8, %p46_p2  ;;  %p1254_p12 = scmp.lt.s32.totalorder %s1452_s17, 2 }
  0x31   : > { %p37_p11 = scmp.eq.s32.totalorder %s36_s27, 0  ;;  %s180_s26 = sand.u32 1, %s1440_s14  }
  0x32   : > { %s955_s4 = sshll.u32 %s180_s26, 5  ;;  %s967_s6 = sshll.u32 %s1448_s16, 9 }
  0x33   : > { %s1584_s5 = scalar_select %p37_p11, %s1440_s14, %s39_s25  }
  0x34   : > { %s1590_s9 = scalar_lea.hbm %s1706_s0, %s967_s6  ;;  %s184_s21 = scalar_lea.vmem [#allocation2], %s955_s4 }
  0x35   : > { %s192_s10 = sshll.u32 %s184_s21, 4  ;;  %p1596_p13 = pnand %p1254_p12, %p1569_p6  ;;  %s1592_s10 = int_to_ptr.vmem [resolvable:$true] %s192_s10 }
  0x36   : > { %s181_s18 = scalar_lea.sflag [#allocation3], %s180_s26  ;;  %s1336_s19 = scalar_lea.hbm %s1590_s9, 512 }
  0x37   : > { %p1337_p0 = scmp.ne.s32.totalorder %s1590_s9, %s1336_s19  ;;  %p1338_p3 = pneg %p1596_p13 }
  0x38   : > { %s1341_s4 = scalar_lea.hbm %s1706_s0, 1024  ;;  %p1342_p9 = scmp.lt.u32.totalorder %s1590_s9, %s1706_s0 }
  0x39   : > { %p1339_p5 = pnand %p1338_p3, %p1337_p0  ;;  %p1343_p1 = scmp.lt.u32.totalorder %s1341_s4, %s1336_s19 }
  0x3a   : > { %p1345_p4 = scmp.lt.u32.totalorder %s1336_s19, %s1590_s9 }
  0x3b   : > { %p1340_p7 = pneg %p1339_p5  ;;  %p1344_p2 = por %p1343_p1, %p1342_p9 }
  0x3d   : > { %p1346_p6 = por %p1345_p4, %p1344_p2 }
  0x3f   : > { %p1347_p8 = pnand %p1346_p6, %p1340_p7 }
  0x41   : > { %1350 = shalt.err (!%p1347_p8)
}
  0x42   : > { %s1351_s26 = scalar_lea.vmem %s1592_s10, 512  ;;  %s1457_s7 = smov [#allocation2]  }
  0x43   : > { %p1352_p12 = scmp.ne.s32.totalorder %s1592_s10, %s1351_s26  ;;  %s1356_s8 = sshll.u32 %s1457_s7, 4  ;;  %s1357_s8 = int_to_ptr.vmem [resolvable:$false] %s1356_s8 }
  0x44   : > { %s1358_s21 = scalar_lea.vmem %s1357_s8, 1024  ;;  %p1359_p5 = scmp.lt.s32.totalorder %s1592_s10, %s1357_s8 }
  0x45   : > { %p1354_p11 = pnand %p1352_p12, %p1338_p3  ;;  %p1360_p9 = scmp.lt.s32.totalorder %s1358_s21, %s1351_s26 }
  0x47   : > { %p1355_p0 = pneg %p1354_p11  ;;  %p1361_p1 = por %p1360_p9, %p1359_p5 }
  0x49   : > { %p1362_p2 = pnand %p1361_p1, %p1355_p0 }
  0x4b   : > { %1365 = shalt.err (!%p1362_p2)
}
  0x4c   : > { %1248 = dma.hbm_to_vmem [thread:$0]  (!%p1596_p13), %s1590_s9, 512, %s1592_s10, %s181_s18  }
  0x4d   : > { %p1724_p7 = scmp.ne.s32.totalorder %s1718_s24, 0 }
  0x4e   : > { %s1628_s19 = sand.u32 (!%p1724_p7), 1, %s1436_s13   ;;  %p1725_p3 = scmp.ne.s32.totalorder (!%p1724_p7), %s1716_s22, 0 }
  0x4f   : > { %201 = sbr.rel (%p1724_p7) target bundleno = 455 (0x1c7), region = 32  ;;  %s959_s25 = sshll.u32 (!%p1724_p7), %s1628_s19, 5 }
  0x50   : > { %s204_s27 = scalar_lea.sflag (!%p1724_p7), [#allocation3], %s1628_s19  ;;  %s1634_s4 = scalar_lea.vmem (!%p1724_p7), [#allocation2], %s959_s25 }
  0x56   : > { %1419 = dma.done.wait (%p1725_p3), %s204_s27, 512  }
  0x57   : > { %1421 = vsyncadd (%p1725_p3), %s204_s27, 4294966784  ;;  %p1726_p13 = scmp.ne.s32.totalorder %s1714_s20, 0 }
  0x59   : > { %1423 = dma.done.wait (%p1726_p13), [#allocation6], 32768  }
  0x5a   : > { %1425 = vsyncadd (%p1726_p13), [#allocation6], 4294934528  ;;  %v250_v0 = vld [vmem:[#allocation5 + $0x8] sm:$0xff]  ;;  %v252_v2 = vld [vmem:[#allocation5 + $0x18] sm:$0xff]  ;;  %s968_s24 = sshll.u32 %s1444_s15, 9  ;;  %s237_s9 = scalar_lea.vmem [#allocation7], %s959_s25 }
  0x5b   : > { %v254_v1 = vld [vmem:[#allocation5 + $0x28] sm:$0xff]  ;;  %v256_v4 = vld [vmem:[#allocation5 + $0x38] sm:$0xff]  ;;  %v249_v5 = vld [vmem:[#allocation5] sm:$0xff]  ;;  %s844_s10 = sshll.u32 %s237_s9, 4  ;;  %s1657_s29 = scalar_lea.hbm %s1709_s3, %s968_s24  ;;  %s1659_s10 = int_to_ptr.vmem [resolvable:$true] %s844_s10 }
  0x5c   : > { %v969_v3 = vpack.c.bf16 %v254_v1, %v250_v0  ;;  %v253_v6 = vld [vmem:[#allocation5 + $0x20] sm:$0xff]  ;;  %v1097_v7 = vpack.c.bf16 %v256_v4, %v252_v2  ;;  %v251_v9 = vld [vmem:[#allocation5 + $0x10] sm:$0xff]  ;;  %v258_v11 = vld [vmem:[#allocation5 + $0x48] sm:$0xff]  ;;  %s828_s15 = scalar_lea.sflag [#allocation4], %s1628_s19  ;;  %s1366_s6 = scalar_lea.vmem %s1659_s10, 512 }
  0x5d   : > { %v971_v8 = vpack.c.bf16 %v253_v6, %v249_v5  ;;  %v255_v10 = vld [vmem:[#allocation5 + $0x30] sm:$0xff]  ;;  %v262_v13 = vld [vmem:[#allocation5 + $0x68] sm:$0xff]  ;;  %v260_v14 = vld [vmem:[#allocation5 + $0x58] sm:$0xff]  ;;  %p1367_p4 = scmp.ne.s32.totalorder %s1659_s10, %s1366_s6  ;;  %s1458_s26 = smov [#allocation7]  }
  0x5e   : > { %970 = vmatprep.subr.bf16.mxu0 %v969_v3  ;;  %v1099_v12 = vpack.c.bf16 %v255_v10, %v251_v9  ;;  %v264_v15 = vld [vmem:[#allocation5 + $0x78] sm:$0xff]  ;;  %1098 = vmatprep.subr.bf16.mxu1 %v1097_v7  ;;  %v973_v16 = vpack.c.bf16 %v262_v13, %v258_v11  ;;  %v257_v18 = vld [vmem:[#allocation5 + $0x40] sm:$0xff]  ;;  %v259_v20 = vld [vmem:[#allocation5 + $0x50] sm:$0xff]  ;;  %s1370_s7 = sshll.u32 %s1458_s26, 4  ;;  %s1371_s7 = int_to_ptr.vmem [resolvable:$false] %s1370_s7 }
  0x5f   : > { %972 = vmatpush1.bf16.msra.mxu0 %v971_v8  ;;  %v1101_v17 = vpack.c.bf16 %v264_v15, %v260_v14  ;;  %v261_v19 = vld [vmem:[#allocation5 + $0x60] sm:$0xff]  ;;  %v263_v22 = vld [vmem:[#allocation5 + $0x70] sm:$0xff]  ;;  %v266_v23 = vld [vmem:[#allocation5 + $0x88] sm:$0xff]  ;;  %p1368_p6 = pnand %p1367_p4, %p1575_p10  ;;  %s1372_s8 = scalar_lea.vmem %s1371_s7, 1024 }
  0x60   : > { %1100 = vmatpush1.bf16.msra.mxu1 %v1099_v12  ;;  %v975_v21 = vpack.c.bf16 %v261_v19, %v257_v18  ;;  %v270_v24 = vld [vmem:[#allocation5 + $0xa8] sm:$0xff]  ;;  %974 = vmatprep.subr.bf16.mxu0 %v973_v16  ;;  %v1103_v25 = vpack.c.bf16 %v263_v22, %v259_v20  ;;  %v268_v27 = vld [vmem:[#allocation5 + $0x98] sm:$0xff]  ;;  %v265_v29 = vld [vmem:[#allocation5 + $0x80] sm:$0xff]  ;;  %p1373_p12 = scmp.lt.s32.totalorder %s1659_s10, %s1371_s7  ;;  %p1374_p11 = scmp.lt.s32.totalorder %s1372_s8, %s1366_s6 }
  0x61   : > { %1102 = vmatprep.subr.bf16.mxu1 %v1101_v17  ;;  %v977_v26 = vpack.c.bf16 %v270_v24, %v266_v23  ;;  %v272_v28 = vld [vmem:[#allocation5 + $0xb8] sm:$0xff]  ;;  %v269_v31 = vld [vmem:[#allocation5 + $0xa0] sm:$0xff]  ;;  %v267_v32 = vld [vmem:[#allocation5 + $0x90] sm:$0xff]  ;;  %p1369_p8 = pneg %p1368_p6 }
  0x62   : > { %v1105_v30 = vpack.c.bf16 %v272_v28, %v268_v27  ;;  %v271_v33 = vld [vmem:[#allocation5 + $0xb0] sm:$0xff]  ;;  %v979_v34 = vpack.c.bf16 %v269_v31, %v265_v29  ;;  %v274_v35 = vld [vmem:[#allocation5 + $0xc8] sm:$0xff]  ;;  %v276_v37 = vld [vmem:[#allocation5 + $0xd8] sm:$0xff]  ;;  %p1375_p0 = por %p1374_p11, %p1373_p12 }
  0x63   : > { %976 = vmatpush1.bf16.msra.mxu0 %v975_v21  ;;  %v278_v36 = vld [vmem:[#allocation5 + $0xe8] sm:$0xff]  ;;  %v1107_v38 = vpack.c.bf16 %v271_v33, %v267_v32  ;;  %v280_v40 = vld [vmem:[#allocation5 + $0xf8] sm:$0xff]  ;;  %v273_v41 = vld [vmem:[#allocation5 + $0xc0] sm:$0xff] }
  0x64   : > { %1104 = vmatpush1.bf16.msra.mxu1 %v1103_v25  ;;  %978 = vmatprep.subr.bf16.mxu0 %v977_v26  ;;  %v981_v39 = vpack.c.bf16 %v278_v36, %v274_v35  ;;  %v277_v42 = vld [vmem:[#allocation5 + $0xe0] sm:$0xff]  ;;  %v1109_v43 = vpack.c.bf16 %v280_v40, %v276_v37  ;;  %v275_v44 = vld [vmem:[#allocation5 + $0xd0] sm:$0xff]  ;;  %v282_v46 = vld [vmem:[#allocation5 + $0x108] sm:$0xff]  ;;  %p1376_p5 = pnand %p1375_p0, %p1369_p8 }
  0x65   : > { %1106 = vmatprep.subr.bf16.mxu1 %v1105_v30  ;;  %v279_v45 = vld [vmem:[#allocation5 + $0xf0] sm:$0xff]  ;;  %v286_v47 = vld [vmem:[#allocation5 + $0x128] sm:$0xff]  ;;  %v284_v48 = vld [vmem:[#allocation5 + $0x118] sm:$0xff]  ;;  %v983_v50 = vpack.c.bf16 %v277_v42, %v273_v41 }
  0x66   : > { %v288_v49 = vld [vmem:[#allocation5 + $0x138] sm:$0xff]  ;;  %v1111_v51 = vpack.c.bf16 %v279_v45, %v275_v44  ;;  %v985_v52 = vpack.c.bf16 %v286_v47, %v282_v46  ;;  %v281_v53 = vld [vmem:[#allocation5 + $0x100] sm:$0xff]  ;;  %v283_v55 = vld [vmem:[#allocation5 + $0x110] sm:$0xff] }
  0x67   : > { %980 = vmatpush1.bf16.msra.mxu0 %v979_v34  ;;  %v285_v54 = vld [vmem:[#allocation5 + $0x120] sm:$0xff]  ;;  %v1113_v56 = vpack.c.bf16 %v288_v49, %v284_v48  ;;  %v287_v57 = vld [vmem:[#allocation5 + $0x130] sm:$0xff]  ;;  %v290_v58 = vld [vmem:[#allocation5 + $0x148] sm:$0xff] }
  0x68   : > { %1108 = vmatpush1.bf16.msra.mxu1 %v1107_v38  ;;  %982 = vmatprep.subr.bf16.mxu0 %v981_v39  ;;  %v294_v59 = vld [vmem:[#allocation5 + $0x168] sm:$0xff]  ;;  %v292_v60 = vld [vmem:[#allocation5 + $0x158] sm:$0xff]  ;;  %v987_v62 = vpack.c.bf16 %v285_v54, %v281_v53  ;;  %v1115_v63 = vpack.c.bf16 %v287_v57, %v283_v55  ;;  %v289_v1 = vld [vmem:[#allocation5 + $0x140] sm:$0xff] }
  0x69   : > { %1110 = vmatprep.subr.bf16.mxu1 %v1109_v43  ;;  %v296_v61 = vld [vmem:[#allocation5 + $0x178] sm:$0xff]  ;;  %v989_v0 = vpack.c.bf16 %v294_v59, %v290_v58  ;;  %v293_v2 = vld [vmem:[#allocation5 + $0x160] sm:$0xff]  ;;  %v291_v3 = vld [vmem:[#allocation5 + $0x150] sm:$0xff] }
  0x6a   : > { %v1117_v4 = vpack.c.bf16 %v296_v61, %v292_v60  ;;  %v295_v5 = vld [vmem:[#allocation5 + $0x170] sm:$0xff]  ;;  %v298_v6 = vld [vmem:[#allocation5 + $0x188] sm:$0xff]  ;;  %v300_v8 = vld [vmem:[#allocation5 + $0x198] sm:$0xff]  ;;  %v991_v10 = vpack.c.bf16 %v293_v2, %v289_v1 }
  0x6b   : > { %984 = vmatpush1.bf16.msra.mxu0 %v983_v50  ;;  %v302_v7 = vld [vmem:[#allocation5 + $0x1a8] sm:$0xff]  ;;  %v304_v9 = vld [vmem:[#allocation5 + $0x1b8] sm:$0xff]  ;;  %v1119_v11 = vpack.c.bf16 %v295_v5, %v291_v3  ;;  %v297_v13 = vld [vmem:[#allocation5 + $0x180] sm:$0xff] }
  0x6c   : > { %1112 = vmatpush1.bf16.msra.mxu1 %v1111_v51  ;;  %986 = vmatprep.subr.bf16.mxu0 %v985_v52  ;;  %v993_v12 = vpack.c.bf16 %v302_v7, %v298_v6  ;;  %v301_v14 = vld [vmem:[#allocation5 + $0x1a0] sm:$0xff]  ;;  %v299_v15 = vld [vmem:[#allocation5 + $0x190] sm:$0xff]  ;;  %v1121_v16 = vpack.c.bf16 %v304_v9, %v300_v8  ;;  %v306_v18 = vld [vmem:[#allocation5 + $0x1c8] sm:$0xff] }
  0x6d   : > { %1114 = vmatprep.subr.bf16.mxu1 %v1113_v56  ;;  %v303_v17 = vld [vmem:[#allocation5 + $0x1b0] sm:$0xff]  ;;  %v310_v19 = vld [vmem:[#allocation5 + $0x1e8] sm:$0xff]  ;;  %v308_v20 = vld [vmem:[#allocation5 + $0x1d8] sm:$0xff]  ;;  %v995_v22 = vpack.c.bf16 %v301_v14, %v297_v13 }
  0x6e   : > { %v312_v21 = vld [vmem:[#allocation5 + $0x1f8] sm:$0xff]  ;;  %v1123_v23 = vpack.c.bf16 %v303_v17, %v299_v15  ;;  %v997_v24 = vpack.c.bf16 %v310_v19, %v306_v18  ;;  %v305_v25 = vld [vmem:[#allocation5 + $0x1c0] sm:$0xff]  ;;  %v307_v27 = vld [vmem:[#allocation5 + $0x1d0] sm:$0xff] }
  0x6f   : > { %988 = vmatpush1.bf16.msra.mxu0 %v987_v62  ;;  %v309_v26 = vld [vmem:[#allocation5 + $0x1e0] sm:$0xff]  ;;  %v1125_v28 = vpack.c.bf16 %v312_v21, %v308_v20  ;;  %v311_v29 = vld [vmem:[#allocation5 + $0x1f0] sm:$0xff]  ;;  %v314_v30 = vld [vmem:[#allocation5 + $0x208] sm:$0xff] }
  0x70   : > { %1116 = vmatpush1.bf16.msra.mxu1 %v1115_v63  ;;  %990 = vmatprep.subr.bf16.mxu0 %v989_v0  ;;  %v318_v31 = vld [vmem:[#allocation5 + $0x228] sm:$0xff]  ;;  %v316_v32 = vld [vmem:[#allocation5 + $0x218] sm:$0xff]  ;;  %v999_v34 = vpack.c.bf16 %v309_v26, %v305_v25  ;;  %v1127_v35 = vpack.c.bf16 %v311_v29, %v307_v27  ;;  %v313_v37 = vld [vmem:[#allocation5 + $0x200] sm:$0xff] }
  0x71   : > { %1118 = vmatprep.subr.bf16.mxu1 %v1117_v4  ;;  %v320_v33 = vld [vmem:[#allocation5 + $0x238] sm:$0xff]  ;;  %v1001_v36 = vpack.c.bf16 %v318_v31, %v314_v30  ;;  %v317_v38 = vld [vmem:[#allocation5 + $0x220] sm:$0xff]  ;;  %v315_v39 = vld [vmem:[#allocation5 + $0x210] sm:$0xff] }
  0x72   : > { %v1129_v40 = vpack.c.bf16 %v320_v33, %v316_v32  ;;  %v319_v41 = vld [vmem:[#allocation5 + $0x230] sm:$0xff]  ;;  %v322_v42 = vld [vmem:[#allocation5 + $0x248] sm:$0xff]  ;;  %v324_v44 = vld [vmem:[#allocation5 + $0x258] sm:$0xff]  ;;  %v1003_v46 = vpack.c.bf16 %v317_v38, %v313_v37 }
  0x73   : > { %992 = vmatpush1.bf16.msra.mxu0 %v991_v10  ;;  %v326_v43 = vld [vmem:[#allocation5 + $0x268] sm:$0xff]  ;;  %v328_v45 = vld [vmem:[#allocation5 + $0x278] sm:$0xff]  ;;  %v1131_v47 = vpack.c.bf16 %v319_v41, %v315_v39  ;;  %v321_v49 = vld [vmem:[#allocation5 + $0x240] sm:$0xff] }
  0x74   : > { %1120 = vmatpush1.bf16.msra.mxu1 %v1119_v11  ;;  %994 = vmatprep.subr.bf16.mxu0 %v993_v12  ;;  %v1005_v48 = vpack.c.bf16 %v326_v43, %v322_v42  ;;  %v325_v50 = vld [vmem:[#allocation5 + $0x260] sm:$0xff]  ;;  %v323_v51 = vld [vmem:[#allocation5 + $0x250] sm:$0xff]  ;;  %v1133_v52 = vpack.c.bf16 %v328_v45, %v324_v44  ;;  %v330_v54 = vld [vmem:[#allocation5 + $0x288] sm:$0xff] }
  0x75   : > { %1122 = vmatprep.subr.bf16.mxu1 %v1121_v16  ;;  %v327_v53 = vld [vmem:[#allocation5 + $0x270] sm:$0xff]  ;;  %v334_v55 = vld [vmem:[#allocation5 + $0x2a8] sm:$0xff]  ;;  %v332_v56 = vld [vmem:[#allocation5 + $0x298] sm:$0xff]  ;;  %v1007_v58 = vpack.c.bf16 %v325_v50, %v321_v49 }
  0x76   : > { %v336_v57 = vld [vmem:[#allocation5 + $0x2b8] sm:$0xff]  ;;  %v1135_v59 = vpack.c.bf16 %v327_v53, %v323_v51  ;;  %v1009_v60 = vpack.c.bf16 %v334_v55, %v330_v54  ;;  %v329_v61 = vld [vmem:[#allocation5 + $0x280] sm:$0xff]  ;;  %v331_v63 = vld [vmem:[#allocation5 + $0x290] sm:$0xff] }
  0x77   : > { %996 = vmatpush1.bf16.msra.mxu0 %v995_v22  ;;  %v333_v62 = vld [vmem:[#allocation5 + $0x2a0] sm:$0xff]  ;;  %v1137_v0 = vpack.c.bf16 %v336_v57, %v332_v56  ;;  %v335_v1 = vld [vmem:[#allocation5 + $0x2b0] sm:$0xff]  ;;  %v338_v2 = vld [vmem:[#allocation5 + $0x2c8] sm:$0xff] }
  0x78   : > { %1124 = vmatpush1.bf16.msra.mxu1 %v1123_v23  ;;  %998 = vmatprep.subr.bf16.mxu0 %v997_v24  ;;  %v342_v3 = vld [vmem:[#allocation5 + $0x2e8] sm:$0xff]  ;;  %v340_v4 = vld [vmem:[#allocation5 + $0x2d8] sm:$0xff]  ;;  %v1011_v6 = vpack.c.bf16 %v333_v62, %v329_v61  ;;  %v337_v7 = vld [vmem:[#allocation5 + $0x2c0] sm:$0xff]  ;;  %v1139_v8 = vpack.c.bf16 %v335_v1, %v331_v63 }
  0x79   : > { %1126 = vmatprep.subr.bf16.mxu1 %v1125_v28  ;;  %v344_v5 = vld [vmem:[#allocation5 + $0x2f8] sm:$0xff]  ;;  %v1013_v9 = vpack.c.bf16 %v342_v3, %v338_v2  ;;  %v341_v10 = vld [vmem:[#allocation5 + $0x2e0] sm:$0xff]  ;;  %v339_v11 = vld [vmem:[#allocation5 + $0x2d0] sm:$0xff] }
  0x7a   : > { %v343_v12 = vld [vmem:[#allocation5 + $0x2f0] sm:$0xff]  ;;  %v1141_v13 = vpack.c.bf16 %v344_v5, %v340_v4  ;;  %v346_v14 = vld [vmem:[#allocation5 + $0x308] sm:$0xff]  ;;  %v348_v17 = vld [vmem:[#allocation5 + $0x318] sm:$0xff]  ;;  %v1015_v19 = vpack.c.bf16 %v341_v10, %v337_v7 }
  0x7b   : > { %1000 = vmatpush1.bf16.msra.mxu0 %v999_v34  ;;  %v350_v15 = vld [vmem:[#allocation5 + $0x328] sm:$0xff]  ;;  %v352_v18 = vld [vmem:[#allocation5 + $0x338] sm:$0xff]  ;;  %v1143_v20 = vpack.c.bf16 %v343_v12, %v339_v11  ;;  %v345_v22 = vld [vmem:[#allocation5 + $0x300] sm:$0xff] }
  0x7c   : > { %1128 = vmatpush1.bf16.msra.mxu1 %v1127_v35  ;;  %1002 = vmatprep.subr.bf16.mxu0 %v1001_v36  ;;  %v246_v16 = vld [vmem:[%s1634_s4 + $0x8] sm:$0xff]  ;;  %v1017_v21 = vpack.c.bf16 %v350_v15, %v346_v14  ;;  %v349_v23 = vld [vmem:[#allocation5 + $0x320] sm:$0xff]  ;;  %v347_v24 = vld [vmem:[#allocation5 + $0x310] sm:$0xff]  ;;  %v1145_v25 = vpack.c.bf16 %v352_v18, %v348_v17 }
  0x7d   : > { %1130 = vmatprep.subr.bf16.mxu1 %v1129_v40  ;;  %591 = vmatprep.mubr.f32.mxu0 %v246_v16  ;;  %v351_v26 = vld [vmem:[#allocation5 + $0x330] sm:$0xff]  ;;  %v354_v27 = vld [vmem:[#allocation5 + $0x348] sm:$0xff]  ;;  %v356_v29 = vld [vmem:[#allocation5 + $0x358] sm:$0xff]  ;;  %v1019_v31 = vpack.c.bf16 %v349_v23, %v345_v22 }
  0x7e   : > { %733 = vmatprep.mubr.f32.mxu1 %v246_v16  ;;  %v358_v28 = vld [vmem:[#allocation5 + $0x368] sm:$0xff]  ;;  %v360_v30 = vld [vmem:[#allocation5 + $0x378] sm:$0xff]  ;;  %v1147_v32 = vpack.c.bf16 %v351_v26, %v347_v24  ;;  %v353_v34 = vld [vmem:[#allocation5 + $0x340] sm:$0xff] }
  0x7f   : > { %1004 = vmatpush1.bf16.msra.mxu0 %v1003_v46  ;;  %v1021_v33 = vpack.c.bf16 %v358_v28, %v354_v27  ;;  %v357_v35 = vld [vmem:[#allocation5 + $0x360] sm:$0xff]  ;;  %v355_v36 = vld [vmem:[#allocation5 + $0x350] sm:$0xff]  ;;  %v1149_v37 = vpack.c.bf16 %v360_v30, %v356_v29  ;;  %v362_v39 = vld [vmem:[#allocation5 + $0x388] sm:$0xff] }
  0x80   : > { %1132 = vmatpush1.bf16.msra.mxu1 %v1131_v47  ;;  %1006 = vmatprep.subr.bf16.mxu0 %v1005_v48  ;;  %v359_v38 = vld [vmem:[#allocation5 + $0x370] sm:$0xff]  ;;  %v366_v40 = vld [vmem:[#allocation5 + $0x3a8] sm:$0xff]  ;;  %v364_v41 = vld [vmem:[#allocation5 + $0x398] sm:$0xff]  ;;  %v1023_v43 = vpack.c.bf16 %v357_v35, %v353_v34 }
  0x81   : > { %1134 = vmatprep.subr.bf16.mxu1 %v1133_v52  ;;  %v368_v42 = vld [vmem:[#allocation5 + $0x3b8] sm:$0xff]  ;;  %v1151_v44 = vpack.c.bf16 %v359_v38, %v355_v36  ;;  %v1025_v45 = vpack.c.bf16 %v366_v40, %v362_v39  ;;  %v361_v46 = vld [vmem:[#allocation5 + $0x380] sm:$0xff]  ;;  %v363_v48 = vld [vmem:[#allocation5 + $0x390] sm:$0xff] }
  0x82   : > { %v365_v47 = vld [vmem:[#allocation5 + $0x3a0] sm:$0xff]  ;;  %v1153_v49 = vpack.c.bf16 %v368_v42, %v364_v41  ;;  %v367_v50 = vld [vmem:[#allocation5 + $0x3b0] sm:$0xff]  ;;  %v370_v51 = vld [vmem:[#allocation5 + $0x3c8] sm:$0xff] }
  0x83   : > { %1008 = vmatpush1.bf16.msra.mxu0 %v1007_v58  ;;  %v374_v52 = vld [vmem:[#allocation5 + $0x3e8] sm:$0xff]  ;;  %v372_v53 = vld [vmem:[#allocation5 + $0x3d8] sm:$0xff]  ;;  %v1027_v55 = vpack.c.bf16 %v365_v47, %v361_v46  ;;  %v1155_v56 = vpack.c.bf16 %v367_v50, %v363_v48  ;;  %v369_v58 = vld [vmem:[#allocation5 + $0x3c0] sm:$0xff] }
  0x84   : > { %1136 = vmatpush1.bf16.msra.mxu1 %v1135_v59  ;;  %1010 = vmatprep.subr.bf16.mxu0 %v1009_v60  ;;  %v376_v54 = vld [vmem:[#allocation5 + $0x3f8] sm:$0xff]  ;;  %v1029_v57 = vpack.c.bf16 %v374_v52, %v370_v51  ;;  %v373_v59 = vld [vmem:[#allocation5 + $0x3e0] sm:$0xff]  ;;  %v371_v60 = vld [vmem:[#allocation5 + $0x3d0] sm:$0xff] }
  0x85   : > { %1138 = vmatprep.subr.bf16.mxu1 %v1137_v0  ;;  %v1157_v61 = vpack.c.bf16 %v376_v54, %v372_v53  ;;  %v375_v62 = vld [vmem:[#allocation5 + $0x3f0] sm:$0xff]  ;;  %v378_v63 = vld [vmem:[#allocation5 + $0x408] sm:$0xff]  ;;  %v380_v1 = vld [vmem:[#allocation5 + $0x418] sm:$0xff]  ;;  %v1031_v3 = vpack.c.bf16 %v373_v59, %v369_v58 }
  0x86   : > { %v382_v0 = vld [vmem:[#allocation5 + $0x428] sm:$0xff]  ;;  %v384_v2 = vld [vmem:[#allocation5 + $0x438] sm:$0xff]  ;;  %v1159_v4 = vpack.c.bf16 %v375_v62, %v371_v60  ;;  %v381_v7 = vld [vmem:[#allocation5 + $0x420] sm:$0xff] }
  0x87   : > { %1012 = vmatpush1.bf16.msra.mxu0 %v1011_v6  ;;  %v1033_v5 = vpack.c.bf16 %v382_v0, %v378_v63  ;;  %v377_v6 = vld [vmem:[#allocation5 + $0x400] sm:$0xff]  ;;  %v383_v10 = vld [vmem:[#allocation5 + $0x430] sm:$0xff]  ;;  %v386_v11 = vld [vmem:[#allocation5 + $0x448] sm:$0xff] }
  0x88   : > { %1140 = vmatpush1.bf16.msra.mxu1 %v1139_v8  ;;  %1014 = vmatprep.subr.bf16.mxu0 %v1013_v9  ;;  %v379_v8 = vld [vmem:[#allocation5 + $0x410] sm:$0xff]  ;;  %v1161_v9 = vpack.c.bf16 %v384_v2, %v380_v1  ;;  %v390_v12 = vld [vmem:[#allocation5 + $0x468] sm:$0xff]  ;;  %v392_v14 = vld [vmem:[#allocation5 + $0x478] sm:$0xff]  ;;  %v1035_v16 = vpack.c.bf16 %v381_v7, %v377_v6 }
  0x89   : > { %1142 = vmatprep.subr.bf16.mxu1 %v1141_v13  ;;  %v388_v13 = vld [vmem:[#allocation5 + $0x458] sm:$0xff]  ;;  %v245_v15 = vld [vmem:[%s1634_s4] sm:$0xff]  ;;  %v1163_v17 = vpack.c.bf16 %v383_v10, %v379_v8  ;;  %v1037_v18 = vpack.c.bf16 %v390_v12, %v386_v11  ;;  %v391_v23 = vld [vmem:[#allocation5 + $0x470] sm:$0xff] }
  0x8a   : > { %v1165_v22 = vpack.c.bf16 %v392_v14, %v388_v13  ;;  %v394_v24 = vld [vmem:[#allocation5 + $0x488] sm:$0xff]  ;;  %v396_v26 = vld [vmem:[#allocation5 + $0x498] sm:$0xff]  ;;  %v399_v35 = vld [vmem:[#allocation5 + $0x4b0] sm:$0xff] }
  0x8b   : > { %1016 = vmatpush1.bf16.msra.mxu0 %v1015_v19  ;;  %v385_v19 = vld [vmem:[#allocation5 + $0x440] sm:$0xff]  ;;  %v400_v27 = vld [vmem:[#allocation5 + $0x4b8] sm:$0xff]  ;;  %v402_v36 = vld [vmem:[#allocation5 + $0x4c8] sm:$0xff] }
  0x8c   : > { %1144 = vmatpush1.bf16.msra.mxu1 %v1143_v20  ;;  %1018 = vmatprep.subr.bf16.mxu0 %v1017_v21  ;;  %v389_v20 = vld [vmem:[#allocation5 + $0x460] sm:$0xff]  ;;  %v387_v21 = vld [vmem:[#allocation5 + $0x450] sm:$0xff]  ;;  %v1169_v34 = vpack.c.bf16 %v400_v27, %v396_v26  ;;  %v404_v38 = vld [vmem:[#allocation5 + $0x4d8] sm:$0xff] }
  0x8d   : > { %1146 = vmatprep.subr.bf16.mxu1 %v1145_v25  ;;  %v398_v25 = vld [vmem:[#allocation5 + $0x4a8] sm:$0xff]  ;;  %v1039_v28 = vpack.c.bf16 %v389_v20, %v385_v19  ;;  %v1167_v29 = vpack.c.bf16 %v391_v23, %v387_v21  ;;  %v408_v39 = vld [vmem:[#allocation5 + $0x4f8] sm:$0xff]  ;;  %v407_v47 = vld [vmem:[#allocation5 + $0x4f0] sm:$0xff] }
  0x8e   : > { %v1041_v30 = vpack.c.bf16 %v398_v25, %v394_v24  ;;  %v1173_v46 = vpack.c.bf16 %v408_v39, %v404_v38  ;;  %v410_v48 = vld [vmem:[#allocation5 + $0x508] sm:$0xff]  ;;  %v412_v50 = vld [vmem:[#allocation5 + $0x518] sm:$0xff]  ;;  %v415_v59 = vld [vmem:[#allocation5 + $0x530] sm:$0xff] }
  0x8f   : > { %1020 = vmatpush1.bf16.msra.mxu0 %v1019_v31  ;;  %v393_v31 = vld [vmem:[#allocation5 + $0x480] sm:$0xff]  ;;  %v416_v51 = vld [vmem:[#allocation5 + $0x538] sm:$0xff]  ;;  %v418_v60 = vld [vmem:[#allocation5 + $0x548] sm:$0xff] }
  0x90   : > { %1148 = vmatpush1.bf16.msra.mxu1 %v1147_v32  ;;  %1022 = vmatprep.subr.bf16.mxu0 %v1021_v33  ;;  %v397_v32 = vld [vmem:[#allocation5 + $0x4a0] sm:$0xff]  ;;  %v395_v33 = vld [vmem:[#allocation5 + $0x490] sm:$0xff]  ;;  %v1177_v58 = vpack.c.bf16 %v416_v51, %v412_v50  ;;  %v420_v62 = vld [vmem:[#allocation5 + $0x558] sm:$0xff] }
  0x91   : > { %1150 = vmatprep.subr.bf16.mxu1 %v1149_v37  ;;  %v406_v37 = vld [vmem:[#allocation5 + $0x4e8] sm:$0xff]  ;;  %v1043_v40 = vpack.c.bf16 %v397_v32, %v393_v31  ;;  %v1171_v41 = vpack.c.bf16 %v399_v35, %v395_v33  ;;  %v424_v63 = vld [vmem:[#allocation5 + $0x578] sm:$0xff]  ;;  %v423_v7 = vld [vmem:[#allocation5 + $0x570] sm:$0xff] }
  0x92   : > { %v1045_v42 = vpack.c.bf16 %v406_v37, %v402_v36  ;;  %v1181_v6 = vpack.c.bf16 %v424_v63, %v420_v62  ;;  %v426_v8 = vld [vmem:[#allocation5 + $0x588] sm:$0xff]  ;;  %v428_v10 = vld [vmem:[#allocation5 + $0x598] sm:$0xff]  ;;  %v425_v13 = vld [vmem:[#allocation5 + $0x580] sm:$0xff] }
  0x93   : > { %1024 = vmatpush1.bf16.msra.mxu0 %v1023_v43  ;;  %v401_v43 = vld [vmem:[#allocation5 + $0x4c0] sm:$0xff]  ;;  %v432_v11 = vld [vmem:[#allocation5 + $0x5b8] sm:$0xff]  ;;  %v434_v20 = vld [vmem:[#allocation5 + $0x5c8] sm:$0xff] }
  0x94   : > { %1152 = vmatpush1.bf16.msra.mxu1 %v1151_v44  ;;  %1026 = vmatprep.subr.bf16.mxu0 %v1025_v45  ;;  %v405_v44 = vld [vmem:[#allocation5 + $0x4e0] sm:$0xff]  ;;  %v403_v45 = vld [vmem:[#allocation5 + $0x4d0] sm:$0xff]  ;;  %v1185_v19 = vpack.c.bf16 %v432_v11, %v428_v10  ;;  %v438_v21 = vld [vmem:[#allocation5 + $0x5e8] sm:$0xff] }
  0x95   : > { %1154 = vmatprep.subr.bf16.mxu1 %v1153_v49  ;;  %v414_v49 = vld [vmem:[#allocation5 + $0x528] sm:$0xff]  ;;  %v1047_v52 = vpack.c.bf16 %v405_v44, %v401_v43  ;;  %v1175_v53 = vpack.c.bf16 %v407_v47, %v403_v45  ;;  %v436_v23 = vld [vmem:[#allocation5 + $0x5d8] sm:$0xff]  ;;  %v1061_v27 = vpack.c.bf16 %v438_v21, %v434_v20  ;;  %v439_v32 = vld [vmem:[#allocation5 + $0x5f0] sm:$0xff] }
  0x96   : > { %v1049_v54 = vpack.c.bf16 %v414_v49, %v410_v48  ;;  %v440_v24 = vld [vmem:[#allocation5 + $0x5f8] sm:$0xff]  ;;  %v442_v33 = vld [vmem:[#allocation5 + $0x608] sm:$0xff]  ;;  %v447_v44 = vld [vmem:[#allocation5 + $0x630] sm:$0xff] }
  0x97   : > { %1028 = vmatpush1.bf16.msra.mxu0 %v1027_v55  ;;  %v409_v55 = vld [vmem:[#allocation5 + $0x500] sm:$0xff]  ;;  %v1189_v31 = vpack.c.bf16 %v440_v24, %v436_v23  ;;  %v444_v35 = vld [vmem:[#allocation5 + $0x618] sm:$0xff]  ;;  %v450_v45 = vld [vmem:[#allocation5 + $0x648] sm:$0xff] }
  0x98   : > { %1156 = vmatpush1.bf16.msra.mxu1 %v1155_v56  ;;  %1030 = vmatprep.subr.bf16.mxu0 %v1029_v57  ;;  %v413_v56 = vld [vmem:[#allocation5 + $0x520] sm:$0xff]  ;;  %v411_v57 = vld [vmem:[#allocation5 + $0x510] sm:$0xff]  ;;  %v448_v36 = vld [vmem:[#allocation5 + $0x638] sm:$0xff] }
  0x99   : > { %1158 = vmatprep.subr.bf16.mxu1 %v1157_v61  ;;  %v422_v61 = vld [vmem:[#allocation5 + $0x568] sm:$0xff]  ;;  %v1051_v0 = vpack.c.bf16 %v413_v56, %v409_v55  ;;  %v1179_v1 = vpack.c.bf16 %v415_v59, %v411_v57  ;;  %v1193_v43 = vpack.c.bf16 %v448_v36, %v444_v35  ;;  %v452_v47 = vld [vmem:[#allocation5 + $0x658] sm:$0xff]  ;;  %v455_v56 = vld [vmem:[#allocation5 + $0x670] sm:$0xff] }
  0x9a   : > { %v1053_v2 = vpack.c.bf16 %v422_v61, %v418_v60  ;;  %v456_v48 = vld [vmem:[#allocation5 + $0x678] sm:$0xff]  ;;  %v458_v57 = vld [vmem:[#allocation5 + $0x688] sm:$0xff]  ;;  %v473_v24 = vld [vmem:[#allocation5 + $0x700] sm:$0xff] }
  0x9b   : > { %1032 = vmatpush1.bf16.msra.mxu0 %v1031_v3  ;;  %v417_v3 = vld [vmem:[#allocation5 + $0x540] sm:$0xff]  ;;  %v1197_v55 = vpack.c.bf16 %v456_v48, %v452_v47  ;;  %v460_v59 = vld [vmem:[#allocation5 + $0x698] sm:$0xff] }
  0x9c   : > { %1160 = vmatpush1.bf16.msra.mxu1 %v1159_v4  ;;  %1034 = vmatprep.subr.bf16.mxu0 %v1033_v5  ;;  %v421_v4 = vld [vmem:[#allocation5 + $0x560] sm:$0xff]  ;;  %v419_v5 = vld [vmem:[#allocation5 + $0x550] sm:$0xff]  ;;  %v464_v60 = vld [vmem:[#allocation5 + $0x6b8] sm:$0xff] }
  0x9d   : > { %1162 = vmatprep.subr.bf16.mxu1 %v1161_v9  ;;  %v430_v9 = vld [vmem:[#allocation5 + $0x5a8] sm:$0xff]  ;;  %v1055_v12 = vpack.c.bf16 %v421_v4, %v417_v3  ;;  %v1183_v14 = vpack.c.bf16 %v423_v7, %v419_v5  ;;  %v1201_v3 = vpack.c.bf16 %v464_v60, %v460_v59  ;;  %v463_v4 = vld [vmem:[#allocation5 + $0x6b0] sm:$0xff]  ;;  %v468_v7 = vld [vmem:[#allocation5 + $0x6d8] sm:$0xff] }
  0x9e   : > { %592 = vmatmul.mubr.f32.vlgmr.msra.gmra.mrb[0].mxu0 %v245_v15  ;;  %v466_v5 = vld [vmem:[#allocation5 + $0x6c8] sm:$0xff]  ;;  %v480_v20 = vld [vmem:[#allocation5 + $0x738] sm:$0xff]  ;;  %v481_v36 = vld [vmem:[#allocation5 + $0x740] sm:$0xff] }
  0x9f   : > { %1036 = vmatpush1.bf16.msra.mxu0 %v1035_v16  ;;  %734 = vmatmul.mubr.f32.vlgmr.msra.gmra.mrb[0].mxu1 %v245_v15  ;;  %v1057_v15 = vpack.c.bf16 %v430_v9, %v426_v8  ;;  %v429_v16 = vld [vmem:[#allocation5 + $0x5a0] sm:$0xff]  ;;  %v472_v8 = vld [vmem:[#allocation5 + $0x6f8] sm:$0xff] }
  0xa0   : > { %1164 = vmatpush1.bf16.msra.mxu1 %v1163_v17  ;;  %1038 = vmatprep.subr.bf16.mxu0 %v1037_v18  ;;  %v427_v17 = vld [vmem:[#allocation5 + $0x590] sm:$0xff]  ;;  %v1059_v25 = vpack.c.bf16 %v429_v16, %v425_v13  ;;  %v469_v13 = vld [vmem:[#allocation5 + $0x6e0] sm:$0xff] }
  0xa1   : > { %1166 = vmatprep.subr.bf16.mxu1 %v1165_v22  ;;  %v431_v18 = vld [vmem:[#allocation5 + $0x5b0] sm:$0xff]  ;;  %v248_v22 = vld [vmem:[%s1634_s4 + $0x18] sm:$0xff]  ;;  %v489_v48 = vld [vmem:[#allocation5 + $0x780] sm:$0xff] }
  0xa2   : > { %662 = vmatprep.mubr.f32.mxu0 %v248_v22  ;;  %804 = vmatprep.mubr.f32.mxu1 %v248_v22  ;;  %v1187_v26 = vpack.c.bf16 %v431_v18, %v427_v17  ;;  %v471_v16 = vld [vmem:[#allocation5 + $0x6f0] sm:$0xff]  ;;  %v474_v17 = vld [vmem:[#allocation5 + $0x708] sm:$0xff]  ;;  %v497_v60 = vld [vmem:[#allocation5 + $0x7c0] sm:$0xff] }
  0xa3   : > { %1040 = vmatpush1.bf16.msra.mxu0 %v1039_v28  ;;  %v433_v28 = vld [vmem:[#allocation5 + $0x5c0] sm:$0xff]  ;;  %v478_v18 = vld [vmem:[#allocation5 + $0x728] sm:$0xff] }
  0xa4   : > { %1168 = vmatpush1.bf16.msra.mxu1 %v1167_v29  ;;  %1042 = vmatprep.subr.bf16.mxu0 %v1041_v30  ;;  %v437_v29 = vld [vmem:[#allocation5 + $0x5e0] sm:$0xff]  ;;  %v435_v30 = vld [vmem:[#allocation5 + $0x5d0] sm:$0xff]  ;;  %v1081_v23 = vpack.c.bf16 %v478_v18, %v474_v17 }
  0xa5   : > { %1170 = vmatprep.subr.bf16.mxu1 %v1169_v34  ;;  %v446_v34 = vld [vmem:[#allocation5 + $0x628] sm:$0xff]  ;;  %v1063_v37 = vpack.c.bf16 %v437_v29, %v433_v28  ;;  %v1191_v38 = vpack.c.bf16 %v439_v32, %v435_v30  ;;  %v479_v28 = vld [vmem:[#allocation5 + $0x730] sm:$0xff]  ;;  %v488_v32 = vld [vmem:[#allocation5 + $0x778] sm:$0xff] }
  0xa6   : > { %v1065_v39 = vpack.c.bf16 %v446_v34, %v442_v33  ;;  %v482_v29 = vld [vmem:[#allocation5 + $0x748] sm:$0xff] }
  0xa7   : > { %1044 = vmatpush1.bf16.msra.mxu0 %v1043_v40  ;;  %v441_v40 = vld [vmem:[#allocation5 + $0x600] sm:$0xff]  ;;  %v486_v30 = vld [vmem:[#allocation5 + $0x768] sm:$0xff] }
  0xa8   : > { %1172 = vmatpush1.bf16.msra.mxu1 %v1171_v41  ;;  %1046 = vmatprep.subr.bf16.mxu0 %v1045_v42  ;;  %v445_v41 = vld [vmem:[#allocation5 + $0x620] sm:$0xff]  ;;  %v443_v42 = vld [vmem:[#allocation5 + $0x610] sm:$0xff]  ;;  %v1085_v35 = vpack.c.bf16 %v486_v30, %v482_v29 }
  0xa9   : > { %1174 = vmatprep.subr.bf16.mxu1 %v1173_v46  ;;  %v454_v46 = vld [vmem:[#allocation5 + $0x668] sm:$0xff]  ;;  %v1067_v49 = vpack.c.bf16 %v445_v41, %v441_v40  ;;  %v1195_v50 = vpack.c.bf16 %v447_v44, %v443_v42  ;;  %v487_v40 = vld [vmem:[#allocation5 + $0x770] sm:$0xff]  ;;  %v496_v44 = vld [vmem:[#allocation5 + $0x7b8] sm:$0xff] }
  0xaa   : > { %v1069_v51 = vpack.c.bf16 %v454_v46, %v450_v45  ;;  %v490_v41 = vld [vmem:[#allocation5 + $0x788] sm:$0xff] }
  0xab   : > { %1048 = vmatpush1.bf16.msra.mxu0 %v1047_v52  ;;  %v449_v52 = vld [vmem:[#allocation5 + $0x640] sm:$0xff]  ;;  %v494_v42 = vld [vmem:[#allocation5 + $0x7a8] sm:$0xff] }
  0xac   : > { %1176 = vmatpush1.bf16.msra.mxu1 %v1175_v53  ;;  %1050 = vmatprep.subr.bf16.mxu0 %v1049_v54  ;;  %v453_v53 = vld [vmem:[#allocation5 + $0x660] sm:$0xff]  ;;  %v451_v54 = vld [vmem:[#allocation5 + $0x650] sm:$0xff]  ;;  %v1089_v47 = vpack.c.bf16 %v494_v42, %v490_v41 }
  0xad   : > { %1178 = vmatprep.subr.bf16.mxu1 %v1177_v58  ;;  %v462_v58 = vld [vmem:[#allocation5 + $0x6a8] sm:$0xff]  ;;  %v1071_v61 = vpack.c.bf16 %v453_v53, %v449_v52  ;;  %v1199_v62 = vpack.c.bf16 %v455_v56, %v451_v54  ;;  %v495_v52 = vld [vmem:[#allocation5 + $0x7b0] sm:$0xff]  ;;  %v504_v56 = vld [vmem:[#allocation5 + $0x7f8] sm:$0xff] }
  0xae   : > { %v1073_v63 = vpack.c.bf16 %v462_v58, %v458_v57  ;;  %v498_v53 = vld [vmem:[#allocation5 + $0x7c8] sm:$0xff] }
  0xaf   : > { %1052 = vmatpush1.bf16.msra.mxu0 %v1051_v0  ;;  %v457_v0 = vld [vmem:[#allocation5 + $0x680] sm:$0xff]  ;;  %v502_v54 = vld [vmem:[#allocation5 + $0x7e8] sm:$0xff] }
  0xb0   : > { %1180 = vmatpush1.bf16.msra.mxu1 %v1179_v1  ;;  %1054 = vmatprep.subr.bf16.mxu0 %v1053_v2  ;;  %v461_v1 = vld [vmem:[#allocation5 + $0x6a0] sm:$0xff]  ;;  %v459_v2 = vld [vmem:[#allocation5 + $0x690] sm:$0xff]  ;;  %v1093_v59 = vpack.c.bf16 %v502_v54, %v498_v53 }
  0xb1   : > { %1182 = vmatprep.subr.bf16.mxu1 %v1181_v6  ;;  %v470_v6 = vld [vmem:[#allocation5 + $0x6e8] sm:$0xff]  ;;  %v1075_v9 = vpack.c.bf16 %v461_v1, %v457_v0  ;;  %v1203_v10 = vpack.c.bf16 %v463_v4, %v459_v2  ;;  %v503_v0 = vld [vmem:[#allocation5 + $0x7f0] sm:$0xff]  ;;  %v507_v4 = vlaneseq }
  0xb2   : > { %v1077_v11 = vpack.c.bf16 %v470_v6, %v466_v5 }
  0xb3   : > { %1056 = vmatpush1.bf16.msra.mxu0 %v1055_v12  ;;  %v465_v12 = vld [vmem:[#allocation5 + $0x6c0] sm:$0xff]  ;;  %v508_v5 = vshrl.u32 %v507_v4, 7 }
  0xb4   : > { %1184 = vmatpush1.bf16.msra.mxu1 %v1183_v14  ;;  %1058 = vmatprep.subr.bf16.mxu0 %v1057_v15  ;;  %v467_v14 = vld [vmem:[#allocation5 + $0x6d0] sm:$0xff]  ;;  %v1205_v15 = vpack.c.bf16 %v472_v8, %v468_v7  ;;  %v1079_v21 = vpack.c.bf16 %v469_v13, %v465_v12  ;;  %v505_v7 = vld [vmem:[%s1708_s2] sm:$0xf] }
  0xb5   : > { %1186 = vmatprep.subr.bf16.mxu1 %v1185_v19  ;;  %v476_v19 = vld [vmem:[#allocation5 + $0x718] sm:$0xff]  ;;  %v1207_v22 = vpack.c.bf16 %v471_v16, %v467_v14  ;;  %v509_v6 = vsub.s32 0, %v508_v5  ;;  %v517_v8 = vsub.s32 2, %v508_v5 }
  0xb7   : > { %1060 = vmatpush1.bf16.msra.mxu0 %v1059_v25  ;;  %v477_v25 = vld [vmem:[#allocation5 + $0x720] sm:$0xff]  ;;  %v518_v12 = vrot.slane %v505_v7, %v517_v8 }
  0xb8   : > { %1188 = vmatpush1.bf16.msra.mxu1 %v1187_v26  ;;  %1062 = vmatprep.subr.bf16.mxu0 %v1061_v27  ;;  %v475_v26 = vld [vmem:[#allocation5 + $0x710] sm:$0xff]  ;;  %v1209_v27 = vpack.c.bf16 %v480_v20, %v476_v19  ;;  %v1083_v33 = vpack.c.bf16 %v477_v25, %v473_v24 }
  0xb9   : > { %1190 = vmatprep.subr.bf16.mxu1 %v1189_v31  ;;  %v484_v31 = vld [vmem:[#allocation5 + $0x758] sm:$0xff]  ;;  %v1211_v34 = vpack.c.bf16 %v479_v28, %v475_v26 }
  0xbb   : > { %1064 = vmatpush1.bf16.msra.mxu0 %v1063_v37  ;;  %v485_v37 = vld [vmem:[#allocation5 + $0x760] sm:$0xff] }
  0xbc   : > { %1192 = vmatpush1.bf16.msra.mxu1 %v1191_v38  ;;  %1066 = vmatprep.subr.bf16.mxu0 %v1065_v39  ;;  %v483_v38 = vld [vmem:[#allocation5 + $0x750] sm:$0xff]  ;;  %v1213_v39 = vpack.c.bf16 %v488_v32, %v484_v31  ;;  %v1087_v45 = vpack.c.bf16 %v485_v37, %v481_v36 }
  0xbd   : > { %1194 = vmatprep.subr.bf16.mxu1 %v1193_v43  ;;  %v492_v43 = vld [vmem:[#allocation5 + $0x798] sm:$0xff]  ;;  %v1215_v46 = vpack.c.bf16 %v487_v40, %v483_v38 }
  0xbf   : > { %1068 = vmatpush1.bf16.msra.mxu0 %v1067_v49  ;;  %v493_v49 = vld [vmem:[#allocation5 + $0x7a0] sm:$0xff] }
  0xc0   : > { %1196 = vmatpush1.bf16.msra.mxu1 %v1195_v50  ;;  %1070 = vmatprep.subr.bf16.mxu0 %v1069_v51  ;;  %v491_v50 = vld [vmem:[#allocation5 + $0x790] sm:$0xff]  ;;  %v1217_v51 = vpack.c.bf16 %v496_v44, %v492_v43  ;;  %v1091_v57 = vpack.c.bf16 %v493_v49, %v489_v48 }
  0xc1   : > { %1198 = vmatprep.subr.bf16.mxu1 %v1197_v55  ;;  %v500_v55 = vld [vmem:[#allocation5 + $0x7d8] sm:$0xff]  ;;  %v1219_v58 = vpack.c.bf16 %v495_v52, %v491_v50 }
  0xc3   : > { %1072 = vmatpush1.bf16.msra.mxu0 %v1071_v61  ;;  %v501_v61 = vld [vmem:[#allocation5 + $0x7e0] sm:$0xff] }
  0xc4   : > { %1200 = vmatpush1.bf16.msra.mxu1 %v1199_v62  ;;  %1074 = vmatprep.subr.bf16.mxu0 %v1073_v63  ;;  %v1221_v62 = vpack.c.bf16 %v504_v56, %v500_v55  ;;  %v499_v63 = vld [vmem:[#allocation5 + $0x7d0] sm:$0xff]  ;;  %v1095_v1 = vpack.c.bf16 %v501_v61, %v497_v60 }
  0xc5   : > { %1202 = vmatprep.subr.bf16.mxu1 %v1201_v3  ;;  %v1223_v2 = vpack.c.bf16 %v503_v0, %v499_v63  ;;  %v247_v3 = vld [vmem:[%s1634_s4 + $0x10] sm:$0xff] }
  0xc7   : > { %1076 = vmatpush1.bf16.msra.mxu0 %v1075_v9  ;;  %v513_v9 = vsub.s32 1, %v508_v5 }
  0xc8   : > { %1204 = vmatpush1.bf16.msra.mxu1 %v1203_v10  ;;  %1078 = vmatprep.subr.bf16.mxu0 %v1077_v11  ;;  %v521_v10 = vsub.s32 3, %v508_v5  ;;  %v510_v11 = vrot.slane %v505_v7, %v509_v6 }
  0xc9   : > { %1206 = vmatprep.subr.bf16.mxu1 %v1205_v15  ;;  %v514_v13 = vrot.slane %v505_v7, %v513_v9 }
  0xca   : > { %v522_v14 = vrot.slane %v505_v7, %v521_v10 }
  0xcb   : > { %1080 = vmatpush1.bf16.msra.mxu0 %v1079_v21 }
  0xcc   : > { %1208 = vmatpush1.bf16.msra.mxu1 %v1207_v22  ;;  %1082 = vmatprep.subr.bf16.mxu0 %v1081_v23 }
  0xcd   : > { %1210 = vmatprep.subr.bf16.mxu1 %v1209_v27 }
  0xcf   : > { %1084 = vmatpush1.bf16.msra.mxu0 %v1083_v33 }
  0xd0   : > { %1212 = vmatpush1.bf16.msra.mxu1 %v1211_v34  ;;  %1086 = vmatprep.subr.bf16.mxu0 %v1085_v35 }
  0xd1   : > { %1214 = vmatprep.subr.bf16.mxu1 %v1213_v39 }
  0xd3   : > { %1088 = vmatpush1.bf16.msra.mxu0 %v1087_v45 }
  0xd4   : > { %1216 = vmatpush1.bf16.msra.mxu1 %v1215_v46  ;;  %1090 = vmatprep.subr.bf16.mxu0 %v1089_v47 }
  0xd5   : > { %1218 = vmatprep.subr.bf16.mxu1 %v1217_v51 }
  0xd7   : > { %1092 = vmatpush1.bf16.msra.mxu0 %v1091_v57 }
  0xd8   : > { %1220 = vmatpush1.bf16.msra.mxu1 %v1219_v58  ;;  %1094 = vmatprep.subr.bf16.mxu0 %v1093_v59 }
  0xd9   : > { %1222 = vmatprep.subr.bf16.mxu1 %v1221_v62 }
  0xdb   : > { %1096 = vmatpush1.bf16.msra.mxu0 %v1095_v1 }
  0xdc   : > { %1224 = vmatpush1.bf16.msra.mxu1 %v1223_v2 }
  0xde   : > { %663 = vmatmul.mubr.f32.vlgmr.msra.gmra.mrb[0].mxu0 %v247_v3 }
  0xdf   : > { %805 = vmatmul.mubr.f32.vlgmr.msra.gmra.mrb[0].mxu1 %v247_v3 }
 0x1b1   : > { %v664_v15 = vpop.f32.mrb[0].mxu0 }
 0x1b2   : > { %v1225_v16 = vadd.f32 %v664_v15, %v510_v11  ;;  %v806_v17 = vpop.f32.mrb[0].mxu1  ;;  %v666_v18 = vpop.f32.mrb[1].mxu0 }
 0x1b3   : > { %v1227_v19 = vadd.f32 %v806_v17, %v518_v12  ;;  %v1226_v20 = vadd.f32 %v666_v18, %v514_v13  ;;  %v808_v21 = vpop.f32.mrb[1].mxu1 }
 0x1b4   : > { %vm811_vm0 = vcmp.gt.f32.partialorder %v1225_v16, 0.0  ;;  %v815_v22 = vmul.f32 0.1, %v1225_v16  ;;  %v1228_v23 = vadd.f32 %v808_v21, %v522_v14 }
 0x1b5   : > { %vm813_vm1 = vcmp.gt.f32.partialorder %v1227_v19, 0.0  ;;  %v817_v24 = vmul.f32 0.1, %v1227_v19  ;;  %vm812_vm2 = vcmp.gt.f32.partialorder %v1226_v20, 0.0  ;;  %v816_v25 = vmul.f32 0.1, %v1226_v20 }
 0x1b6   : > { %v819_v26 = vsel %vm811_vm0, %v1225_v16, %v815_v22  ;;  %vm814_vm3 = vcmp.gt.f32.partialorder %v1228_v23, 0.0  ;;  %v818_v27 = vmul.f32 0.1, %v1228_v23 }
 0x1b7   : > { %823 = vst [vmem:[%s237_s9] sm:$0xff] %v819_v26  ;;  %v821_v28 = vsel %vm813_vm1, %v1227_v19, %v817_v24  ;;  %v820_v29 = vsel %vm812_vm2, %v1226_v20, %v816_v25 }
 0x1b8   : > { %825 = vst [vmem:[%s237_s9 + $0x10] sm:$0xff] %v821_v28  ;;  %824 = vst [vmem:[%s237_s9 + $0x8] sm:$0xff] %v820_v29  ;;  %v822_v30 = vsel %vm814_vm3, %v1228_v23, %v818_v27 }
 0x1b9   : > { %826 = vst [vmem:[%s237_s9 + $0x18] sm:$0xff] %v822_v30 }
 0x1ba   : > { %1379 = shalt.err (!%p1376_p5)
}
 0x1bb   : > { %s1380_s21 = scalar_lea.hbm %s1657_s29, 512  ;;  %s1384_s27 = scalar_lea.hbm %s1709_s3, 1024 }
 0x1bc   : > { %p1381_p9 = scmp.ne.s32.totalorder %s1657_s29, %s1380_s21  ;;  %p1385_p7 = scmp.lt.u32.totalorder %s1657_s29, %s1709_s3 }
 0x1bd   : > { %p1386_p3 = scmp.lt.u32.totalorder %s1384_s27, %s1380_s21  ;;  %p1388_p4 = scmp.lt.u32.totalorder %s1380_s21, %s1657_s29 }
 0x1be   : > { %p1382_p1 = pnand %p1381_p9, %p1575_p10 }
 0x1bf   : > { %p1387_p13 = por %p1386_p3, %p1385_p7 }
 0x1c0   : > { %p1383_p2 = pneg %p1382_p1 }
 0x1c1   : > { %p1389_p6 = por %p1388_p4, %p1387_p13 }
 0x1c3   : > { %p1390_p8 = pnand %p1389_p6, %p1383_p2 }
 0x1c5   : > { %1393 = shalt.err (!%p1390_p8)
}
 0x1c6   : > { %1239 = dma.vmem_to_hbm [thread:$0]  (%p1575_p10), %s1659_s10, 512, %s1657_s29, %s828_s15  }
 0x1c7 PF: > { %s856_s22 = sand.u32 1, %s1432_s12   ;;  %p1727_p12 = scmp.ne.s32.totalorder %s1717_s23, 0 }
 0x1c8   : > { %p1728_p11 = scmp.ge.s32.totalorder %s1452_s17, 2  ;;  %s857_s24 = scalar_lea.sflag [#allocation4], %s856_s22 }
 0x1ca   : > { %p1250_p0 = pnand %p1728_p11, %p1727_p12 }
 0x1cc   : > { %1427 = dma.done.wait (!%p1250_p0), %s857_s24, 512  }
 0x1cd   : > { %1429 = vsyncadd (!%p1250_p0), %s857_s24, 4294966784  ;;  %s20_s17 = sadd.s32 1, %s1452_s17   ;;  %s1729_s12 = smov %s1436_s13 }
 0x1ce   : > { %p17_p5 = scmp.ge.s32.totalorder %s20_s17, 4   ;;  %s1730_s13 = smov %s1440_s14 }
 0x1cf   : > { %s1731_s14 = smov %s1584_s5  ;;  %s1732_s15 = smov %s1448_s16 }
 0x1d0   : > { %s1733_s16 = smov %s1735_s28  ;;  %19 = sbr.rel (!%p17_p5) target bundleno = 7 (0x7), region = 85 }
 0x1d7   :  { %862 = vsyncpa [#allocation3], 1 }
 0x1d8   :  { %864 = vsyncpa [#allocation3 + $0x1], 1 }
 0x1d9   :  { %865 = vsyncpa [#allocation6], 1 }
 0x1da   :  { %866 = vsyncpa [#allocation4], 1 }
 0x1db   :  { %868 = vsyncpa [#allocation4 + $0x1], 1 }

</bundles_post_ra>
